<compile_context>
chip_gen: v5e
topology: v5e:2x2
jax: 0.10.0
libtpu: 0.0.40
codegen_flags: <defaults>
</compile_context>

<pallas_src>
import jax
import jax.numpy as jnp
from jax.experimental import pallas as pl
from jax.experimental.pallas import tpu as pltpu


def _lane_pad(d, lane=128):
    """Round a feature width up to the vreg/MXU lane width."""
    return ((d + lane - 1) // lane) * lane


def make_gcn_kernel(B, H, n_layers):
    """B = number of graphs (contiguous, equal-size), H = hidden channels."""

    def kernel(a_ref, x_ref, w0_ref, wr_ref, bias_ref, maskm_ref,
               wout_ref, bout_ref, pooled_ref, out_ref):
        a = a_ref[...]                       # [N, N] bf16 normalized adjacency
        h = x_ref[...]                       # [N, F] bf16 node features
        hf = None

        # 4 x GCNConv:  h <- ReLU( A_norm @ h @ W + b ), W pre-transposed [in, out].
        for l in range(n_layers):
            w = w0_ref[...] if l == 0 else wr_ref[l - 1]      # [f_in, f_out] bf16
            f_in, f_out = w.shape
            if _lane_pad(f_in) < _lane_pad(f_out):
                # (A @ h) @ W only wins if the *lane-padded* input width is
                # smaller; raw f_in < f_out buys nothing once both pad to the
                # same MXU output width.
                ah = jnp.dot(a, h, preferred_element_type=jnp.float32)
                z = jnp.dot(ah.astype(jnp.bfloat16), w,
                            preferred_element_type=jnp.float32)
            else:
                hw = jnp.dot(h, w, preferred_element_type=jnp.float32)
                z = jnp.dot(a, hw.astype(jnp.bfloat16),
                            preferred_element_type=jnp.float32)
            hf = jnp.maximum(z + bias_ref[l:l + 1, :], 0.0)   # f32 bias add + ReLU
            h = hf.astype(jnp.bfloat16)

        # global_mean_pool: inv-count pre-folded into maskm -> one bf16 MXU matmul.
        mean_pool = jnp.dot(maskm_ref[...], h,
                            preferred_element_type=jnp.float32)        # [B, H] f32

        # global_max_pool: contiguous equal-size graphs -> reshape + sublane max.
        n_nodes = hf.shape[0]
        max_pool = jnp.max(hf.reshape(B, n_nodes // B, H), axis=1)     # [B, H] f32

        # pooled = concat([mean, max]) built in vregs; single lane-dense store.
        pooled = jnp.concatenate([mean_pool, max_pool], axis=1)        # [B, 2H] f32
        pooled_ref[...] = pooled

        # Head Linear(2H -> C); bf16 MXU inputs, f32 accumulation + bias.
        # (sigmoid is defined in the module but never used in forward.)
        out_ref[...] = (jnp.dot(pooled.astype(jnp.bfloat16), wout_ref[...],
                                preferred_element_type=jnp.float32)
                        + bout_ref[...])

    return kernel


def gcn_molecule_classification_forward(x, a_norm, mask_scaled, params):
    """Returns (out, pooled) matching the PyTorch module's (out, x).

    Assumes graphs are contiguous in node order and equal-sized (true for the
    dense inputs built by build_dense_gcn_inputs below).
    """
    N, F = x.shape
    B = mask_scaled.shape[0]
    H = params["w_conv"][0].shape[0]
    C = params["w_out"].shape[0]
    n_layers = len(params["w_conv"])
    assert N % B == 0, "equal-size contiguous graphs expected"

    # Host-side layout prep (one-time): pre-transpose weights to [in, out],
    # pack the small operands, cast MXU operands to bf16 (f32 accumulation is
    # preserved in-kernel via preferred_element_type).
    a_bf = a_norm.astype(jnp.bfloat16)                              # [N, N]
    x_bf = x.astype(jnp.bfloat16)                                   # [N, F]
    w0 = params["w_conv"][0].T.astype(jnp.bfloat16)                 # [F, H]
    w_rest = jnp.stack([w.T for w in params["w_conv"][1:]]).astype(jnp.bfloat16)  # [L-1, H, H]
    biases = jnp.concatenate(params["b_conv"], axis=0).astype(jnp.float32)        # [L, H]
    maskm = mask_scaled.astype(jnp.bfloat16)                        # [B, N]
    wout_t = params["w_out"].T.astype(jnp.bfloat16)                 # [2H, C]
    bout = params["b_out"].astype(jnp.float32)                      # [1, C]

    inputs = [a_bf, x_bf, w0, w_rest, biases, maskm, wout_t, bout]

    # Scoped-VMEM budget from actual buffer sizes (+ intermediate headroom),
    # capped well under v7x's 64 MiB physical VMEM.
    io_bytes = sum(int(v.size) * v.dtype.itemsize for v in inputs)
    io_bytes += (B * 2 * H + B * C) * 4
    interm_bytes = 8 * N * max(F, H) * 4
    vmem_limit = int(min(32 * 1024 * 1024,
                         max(4 * 1024 * 1024, 2 * io_bytes + interm_bytes)))

    kernel = make_gcn_kernel(B, H, n_layers)
    vmem = pl.BlockSpec(memory_space=pltpu.MemorySpace.VMEM)

    pooled, out = pl.pallas_call(
        kernel,
        out_shape=(
            jax.ShapeDtypeStruct((B, 2 * H), jnp.float32),   # pooled ("x" return)
            jax.ShapeDtypeStruct((B, C), jnp.float32),       # logits ("out" return)
        ),
        in_specs=[vmem] * len(inputs),
        out_specs=(vmem, vmem),
        compiler_params=pltpu.CompilerParams(vmem_limit_bytes=vmem_limit),
    )(*inputs)

    return out, pooled


def build_dense_gcn_inputs(edge_index, batch_index, num_nodes, num_graphs):
    """Dense normalized adjacency + mean-pool weights.  Plain-JAX scatter glue."""
    src = edge_index[0]
    dst = edge_index[1]
    a = jnp.zeros((num_nodes, num_nodes), jnp.float32)
    a = a.at[dst, src].add(1.0)                 # A[i, j] = 1 if edge j -> i
    a_hat = a + jnp.eye(num_nodes, dtype=jnp.float32)
    deg = a_hat.sum(axis=1)                     # degree incl. self loop
    dinv = 1.0 / jnp.sqrt(deg)
    a_norm = dinv[:, None] * a_hat * dinv[None, :]

    mask = (batch_index[None, :] == jnp.arange(num_graphs)[:, None]).astype(jnp.float32)
    inv_cnt = 1.0 / jnp.maximum(mask.sum(axis=1, keepdims=True), 1.0)
    mask_scaled = mask * inv_cnt                # [B, N] mean-pool weights
    return a_norm, mask_scaled


def init_params(key, input_dim, hidden, num_classes, gcn_layers=4):
    """Deterministic synthetic parameters (Glorot-ish), PyTorch [out, in] layout."""
    params = {"w_conv": [], "b_conv": []}
    dims_in = [input_dim] + [hidden] * (gcn_layers - 1)
    for li in range(gcn_layers):
        key, k1, k2 = jax.random.split(key, 3)
        fan_in, fan_out = dims_in[li], hidden
        scale = jnp.sqrt(6.0 / (fan_in + fan_out))
        params["w_conv"].append(
            jax.random.uniform(k1, (fan_out, fan_in), jnp.float32, -scale, scale))
        params["b_conv"].append(
            jax.random.uniform(k2, (1, fan_out), jnp.float32, -0.05, 0.05))
    key, k1, k2 = jax.random.split(key, 3)
    in_dim = 2 * hidden   # mean + max aggregations
    scale = 1.0 / jnp.sqrt(in_dim)
    params["w_out"] = jax.random.uniform(k1, (num_classes, in_dim), jnp.float32, -scale, scale)
    params["b_out"] = jax.random.uniform(k2, (1, num_classes), jnp.float32, -scale, scale)
    return params


if __name__ == "__main__":
    # Small shapes: 2 graphs x 8 nodes = 16 nodes, 16 input features,
    # hidden_channels = [64] (module default; 2H = 128 lanes -> lane-dense
    # pooled output), 4 GCN layers, num_classes = 1.
    N, F, H, B, C = 16, 16, 64, 2, 1

    key = jax.random.PRNGKey(0)
    key, kx = jax.random.split(key)
    x = jax.random.normal(kx, (N, F), jnp.float32)

    # Deterministic bidirectional ring edges inside each graph (contiguous,
    # equal-size graphs -> the in-kernel reshape max pool is exact).
    src, dst = [], []
    for g in range(B):
        base = g * (N // B)
        n_g = N // B
        for i in range(n_g):
            j = (i + 1) % n_g
            src += [base + i, base + j]
            dst += [base + j, base + i]
    edge_index = jnp.array([src, dst], dtype=jnp.int32)               # [2, E]
    batch_index = jnp.repeat(jnp.arange(B, dtype=jnp.int32), N // B)  # [N]

    a_norm, mask_scaled = build_dense_gcn_inputs(edge_index, batch_index, N, B)
    params = init_params(jax.random.PRNGKey(42), F, H, C, gcn_layers=4)

    out, pooled = gcn_molecule_classification_forward(x, a_norm, mask_scaled, params)
    out = jax.block_until_ready(out)
    pooled = jax.block_until_ready(pooled)

    assert out.shape == (B, C)
    assert pooled.shape == (B, 2 * H)
    assert bool(jnp.all(jnp.isfinite(out))) and bool(jnp.all(jnp.isfinite(pooled)))
    print("KERNEL_OK")
</pallas_src>

<mosaic_0001>
module attributes {stable_mosaic.version = 11 : i64} {
  func.func @kernel(%arg0: memref<16x16xbf16, #tpu.memory_space<vmem>>, %arg1: memref<16x16xbf16, #tpu.memory_space<vmem>>, %arg2: memref<16x64xbf16, #tpu.memory_space<vmem>>, %arg3: memref<3x64x64xbf16, #tpu.memory_space<vmem>>, %arg4: memref<4x64xf32, #tpu.memory_space<vmem>>, %arg5: memref<2x16xbf16, #tpu.memory_space<vmem>>, %arg6: memref<128x1xbf16, #tpu.memory_space<vmem>>, %arg7: memref<1x1xf32, #tpu.memory_space<vmem>>, %arg8: memref<2x128xf32, #tpu.memory_space<vmem>>, %arg9: memref<2x1xf32, #tpu.memory_space<vmem>>) attributes {dimension_semantics = [], scalar_prefetch = 0 : i64, scratch_operands = 0 : i64, tpu.core_type = #tpu.core_type<tc>} {
    %c0 = arith.constant 0 : index
    %c0_0 = arith.constant 0 : index
    %0 = vector.load %arg0[%c0, %c0_0] : memref<16x16xbf16, #tpu.memory_space<vmem>>, vector<16x16xbf16>
    %c0_1 = arith.constant 0 : index
    %c0_2 = arith.constant 0 : index
    %1 = vector.load %arg1[%c0_1, %c0_2] : memref<16x16xbf16, #tpu.memory_space<vmem>>, vector<16x16xbf16>
    %c0_3 = arith.constant 0 : index
    %c0_4 = arith.constant 0 : index
    %2 = vector.load %arg2[%c0_3, %c0_4] : memref<16x64xbf16, #tpu.memory_space<vmem>>, vector<16x64xbf16>
    %cst = arith.constant dense<0.000000e+00> : vector<16x64xf32>
    %3 = tpu.matmul %1, %2, %cst {dimension_numbers = #tpu.dot_dimension_numbers<[1], [0], [0], [1], [0, 0, 1, 1], [], []>} : vector<16x16xbf16>, vector<16x64xbf16>, vector<16x64xf32> -> vector<16x64xf32>
    %4 = arith.truncf %3 : vector<16x64xf32> to vector<16x64xbf16>
    %cst_5 = arith.constant dense<0.000000e+00> : vector<16x64xf32>
    %5 = tpu.matmul %0, %4, %cst_5 {dimension_numbers = #tpu.dot_dimension_numbers<[1], [0], [0], [1], [0, 0, 1, 1], [], []>} : vector<16x16xbf16>, vector<16x64xbf16>, vector<16x64xf32> -> vector<16x64xf32>
    %c0_6 = arith.constant 0 : index
    %c0_7 = arith.constant 0 : index
    %6 = vector.load %arg4[%c0_6, %c0_7] : memref<4x64xf32, #tpu.memory_space<vmem>>, vector<1x64xf32>
    %7 = vector.broadcast %6 : vector<1x64xf32> to vector<16x64xf32>
    %8 = arith.addf %5, %7 : vector<16x64xf32>
    %cst_8 = arith.constant 0.000000e+00 : f32
    %9 = vector.broadcast %cst_8 : f32 to vector<16x64xf32>
    %10 = arith.maximumf %8, %9 : vector<16x64xf32>
    %11 = arith.truncf %10 : vector<16x64xf32> to vector<16x64xbf16>
    %c0_9 = arith.constant 0 : index
    %c0_10 = arith.constant 0 : index
    %c0_11 = arith.constant 0 : index
    %12 = vector.load %arg3[%c0_9, %c0_10, %c0_11] : memref<3x64x64xbf16, #tpu.memory_space<vmem>>, vector<1x64x64xbf16>
    %13 = vector.shape_cast %12 : vector<1x64x64xbf16> to vector<64x64xbf16>
    %cst_12 = arith.constant dense<0.000000e+00> : vector<16x64xf32>
    %14 = tpu.matmul %11, %13, %cst_12 {dimension_numbers = #tpu.dot_dimension_numbers<[1], [0], [0], [1], [0, 0, 1, 1], [], []>} : vector<16x64xbf16>, vector<64x64xbf16>, vector<16x64xf32> -> vector<16x64xf32>
    %15 = arith.truncf %14 : vector<16x64xf32> to vector<16x64xbf16>
    %cst_13 = arith.constant dense<0.000000e+00> : vector<16x64xf32>
    %16 = tpu.matmul %0, %15, %cst_13 {dimension_numbers = #tpu.dot_dimension_numbers<[1], [0], [0], [1], [0, 0, 1, 1], [], []>} : vector<16x16xbf16>, vector<16x64xbf16>, vector<16x64xf32> -> vector<16x64xf32>
    %c1 = arith.constant 1 : index
    %c0_14 = arith.constant 0 : index
    %17 = vector.load %arg4[%c1, %c0_14] : memref<4x64xf32, #tpu.memory_space<vmem>>, vector<1x64xf32>
    %18 = vector.broadcast %17 : vector<1x64xf32> to vector<16x64xf32>
    %19 = arith.addf %16, %18 : vector<16x64xf32>
    %cst_15 = arith.constant 0.000000e+00 : f32
    %20 = vector.broadcast %cst_15 : f32 to vector<16x64xf32>
    %21 = arith.maximumf %19, %20 : vector<16x64xf32>
    %22 = arith.truncf %21 : vector<16x64xf32> to vector<16x64xbf16>
    %c1_16 = arith.constant 1 : index
    %c0_17 = arith.constant 0 : index
    %c0_18 = arith.constant 0 : index
    %23 = vector.load %arg3[%c1_16, %c0_17, %c0_18] : memref<3x64x64xbf16, #tpu.memory_space<vmem>>, vector<1x64x64xbf16>
    %24 = vector.shape_cast %23 : vector<1x64x64xbf16> to vector<64x64xbf16>
    %cst_19 = arith.constant dense<0.000000e+00> : vector<16x64xf32>
    %25 = tpu.matmul %22, %24, %cst_19 {dimension_numbers = #tpu.dot_dimension_numbers<[1], [0], [0], [1], [0, 0, 1, 1], [], []>} : vector<16x64xbf16>, vector<64x64xbf16>, vector<16x64xf32> -> vector<16x64xf32>
    %26 = arith.truncf %25 : vector<16x64xf32> to vector<16x64xbf16>
    %cst_20 = arith.constant dense<0.000000e+00> : vector<16x64xf32>
    %27 = tpu.matmul %0, %26, %cst_20 {dimension_numbers = #tpu.dot_dimension_numbers<[1], [0], [0], [1], [0, 0, 1, 1], [], []>} : vector<16x16xbf16>, vector<16x64xbf16>, vector<16x64xf32> -> vector<16x64xf32>
    %c2 = arith.constant 2 : index
    %c0_21 = arith.constant 0 : index
    %28 = vector.load %arg4[%c2, %c0_21] : memref<4x64xf32, #tpu.memory_space<vmem>>, vector<1x64xf32>
    %29 = vector.broadcast %28 : vector<1x64xf32> to vector<16x64xf32>
    %30 = arith.addf %27, %29 : vector<16x64xf32>
    %cst_22 = arith.constant 0.000000e+00 : f32
    %31 = vector.broadcast %cst_22 : f32 to vector<16x64xf32>
    %32 = arith.maximumf %30, %31 : vector<16x64xf32>
    %33 = arith.truncf %32 : vector<16x64xf32> to vector<16x64xbf16>
    %c2_23 = arith.constant 2 : index
    %c0_24 = arith.constant 0 : index
    %c0_25 = arith.constant 0 : index
    %34 = vector.load %arg3[%c2_23, %c0_24, %c0_25] : memref<3x64x64xbf16, #tpu.memory_space<vmem>>, vector<1x64x64xbf16>
    %35 = vector.shape_cast %34 : vector<1x64x64xbf16> to vector<64x64xbf16>
    %cst_26 = arith.constant dense<0.000000e+00> : vector<16x64xf32>
    %36 = tpu.matmul %33, %35, %cst_26 {dimension_numbers = #tpu.dot_dimension_numbers<[1], [0], [0], [1], [0, 0, 1, 1], [], []>} : vector<16x64xbf16>, vector<64x64xbf16>, vector<16x64xf32> -> vector<16x64xf32>
    %37 = arith.truncf %36 : vector<16x64xf32> to vector<16x64xbf16>
    %cst_27 = arith.constant dense<0.000000e+00> : vector<16x64xf32>
    %38 = tpu.matmul %0, %37, %cst_27 {dimension_numbers = #tpu.dot_dimension_numbers<[1], [0], [0], [1], [0, 0, 1, 1], [], []>} : vector<16x16xbf16>, vector<16x64xbf16>, vector<16x64xf32> -> vector<16x64xf32>
    %c3 = arith.constant 3 : index
    %c0_28 = arith.constant 0 : index
    %39 = vector.load %arg4[%c3, %c0_28] : memref<4x64xf32, #tpu.memory_space<vmem>>, vector<1x64xf32>
    %40 = vector.broadcast %39 : vector<1x64xf32> to vector<16x64xf32>
    %41 = arith.addf %38, %40 : vector<16x64xf32>
    %cst_29 = arith.constant 0.000000e+00 : f32
    %42 = vector.broadcast %cst_29 : f32 to vector<16x64xf32>
    %43 = arith.maximumf %41, %42 : vector<16x64xf32>
    %44 = arith.truncf %43 : vector<16x64xf32> to vector<16x64xbf16>
    %c0_30 = arith.constant 0 : index
    %c0_31 = arith.constant 0 : index
    %45 = vector.load %arg5[%c0_30, %c0_31] : memref<2x16xbf16, #tpu.memory_space<vmem>>, vector<2x16xbf16>
    %cst_32 = arith.constant dense<0.000000e+00> : vector<2x64xf32>
    %46 = tpu.matmul %45, %44, %cst_32 {dimension_numbers = #tpu.dot_dimension_numbers<[1], [0], [0], [1], [0, 0, 1, 1], [], []>} : vector<2x16xbf16>, vector<16x64xbf16>, vector<2x64xf32> -> vector<2x64xf32>
    %47 = vector.shape_cast %43 : vector<16x64xf32> to vector<2x8x64xf32>
    %cst_33 = arith.constant dense<0xFF800000> : vector<2x64xf32>
    %48 = vector.multi_reduction <maximumf>, %47, %cst_33 [1] : vector<2x8x64xf32> to vector<2x64xf32>
    %49 = tpu.concatenate %46, %48 in 1 : vector<2x64xf32>, vector<2x64xf32> -> vector<2x128xf32>
    %c0_34 = arith.constant 0 : index
    %c0_35 = arith.constant 0 : index
    %50 = vector.load %arg8[%c0_34, %c0_35] : memref<2x128xf32, #tpu.memory_space<vmem>>, vector<2x128xf32>
    tpu.vector_store %arg8[%c0_34, %c0_35], %49 {strides = array<i32>} : memref<2x128xf32, #tpu.memory_space<vmem>>, vector<2x128xf32>,
    %51 = arith.truncf %49 : vector<2x128xf32> to vector<2x128xbf16>
    %c0_36 = arith.constant 0 : index
    %c0_37 = arith.constant 0 : index
    %52 = vector.load %arg6[%c0_36, %c0_37] : memref<128x1xbf16, #tpu.memory_space<vmem>>, vector<128x1xbf16>
    %cst_38 = arith.constant dense<0.000000e+00> : vector<2x1xf32>
    %53 = tpu.matmul %51, %52, %cst_38 {dimension_numbers = #tpu.dot_dimension_numbers<[1], [0], [0], [1], [0, 0, 1, 1], [], []>} : vector<2x128xbf16>, vector<128x1xbf16>, vector<2x1xf32> -> vector<2x1xf32>
    %c0_39 = arith.constant 0 : index
    %c0_40 = arith.constant 0 : index
    %54 = vector.load %arg7[%c0_39, %c0_40] : memref<1x1xf32, #tpu.memory_space<vmem>>, vector<1x1xf32>
    %55 = vector.broadcast %54 : vector<1x1xf32> to vector<2x1xf32>
    %56 = arith.addf %53, %55 : vector<2x1xf32>
    %c0_41 = arith.constant 0 : index
    %c0_42 = arith.constant 0 : index
    %57 = vector.load %arg9[%c0_41, %c0_42] : memref<2x1xf32, #tpu.memory_space<vmem>>, vector<2x1xf32>
    tpu.vector_store %arg9[%c0_41, %c0_42], %56 {strides = array<i32>} : memref<2x1xf32, #tpu.memory_space<vmem>>, vector<2x1xf32>,
    return
  }
}

</mosaic_0001>

<bundles_post_ra>
// kernel: tpu_custom_call.1
= control target key start
LH: loop header
LB: loop body
LE: loop exit
PB: predicated region body
PF: predicated region fallthrough
CT: control target
= control target key end

     0   :  { %s789_s0 = inlined_call_operand.vmem [shape: bf16[16,16], index: 0, kind: input, shape index: {}]   ;;  %s790_s1 = inlined_call_operand.vmem [shape: bf16[16,16], index: 1, kind: input, shape index: {}]   ;;  %s791_s2 = inlined_call_operand.vmem [shape: bf16[16,64], index: 2, kind: input, shape index: {}]   ;;  %s792_s3 = inlined_call_operand.hbm [shape: bf16[3,64,64], index: 3, kind: input, shape index: {}]   ;;  %s793_s4 = inlined_call_operand.vmem [shape: f32[4,64], index: 4, kind: input, shape index: {}]   ;;  %s794_s5 = inlined_call_operand.vmem [shape: bf16[2,16], index: 5, kind: input, shape index: {}]   ;;  %s795_s6 = inlined_call_operand.vmem [shape: bf16[128,1], index: 6, kind: input, shape index: {}]   ;;  %s796_s7 = inlined_call_operand.<no memory space> [shape: f32[1,1], index: 7, kind: input, shape index: {}]   ;;  %s797_s8 = inlined_call_operand.hbm [shape: f32[2,128], index: 8, kind: output, shape index: {0}]   ;;  %s798_s9 = inlined_call_operand.vmem [shape: f32[2,1], index: 9, kind: output, shape index: {1}]  }
   0x1   :  { %v15_v0 = vstv %s796_s7 }
   0x2   :  { %16 = vst [vmem:[#allocation2] sm:$0x1] %v15_v0 }
   0x3   :  { %17 = vsyncpa [#allocation4], 0 }
   0x4   :  { %18 = vsyncpa [#allocation5], 0  ;;  %s29_s13 = sshll.u32 %s792_s3, 4  ;;  %s654_s14 = smov [#allocation3]   ;;  %s30_s13 = int_to_ptr.hbm [resolvable:$true] %s29_s13 }
   0x5   :  { %s31_s15 = sshll.u32 %s654_s14, 4  ;;  %s655_s16 = smov 64   ;;  %s32_s15 = int_to_ptr.vmem [resolvable:$true] %s31_s15 }
   0x6   :  { %s656_s17 = smov 4  }
   0x7   :  { %37 = dma.hbm_to_vmem [thread:$0]  %s30_s13, 1536, %s32_s15, [#allocation4], %s655_s16, %s655_s16, %s656_s17  }
   0x8   :  { %650 = dma.done.wait [#allocation4], 1536  }
   0x9   :  { %651 = vsyncadd [#allocation4], 4294965760  ;;  %v572_v1 = vld [vmem:[%s791_s2] sm:$0xff]  ;;  %vm68_vm0 = vcmask 130048   ;;  %v575_v8 = vld [vmem:[#allocation3 + $0x10] sm:$0xff]  ;;  %vm146_vm1 = vcmask 523264  }
   0xa   :  { %v571_v2 = vld [vmem:[%s790_s1] sm:$0xff]  ;;  %79 = vmatpush.bf16.msra.mxu0 %v572_v1  ;;  %v574_v9 = vld [vmem:[#allocation3 + $0x8] sm:$0xff]  ;;  %v579_v23 = vld [vmem:[#allocation3 + $0x30] sm:$0xff]  ;;  %vm357_vm2 = vcmask 1041409   ;;  %s657_s21 = smov [#allocation6]   ;;  %s455_s22 = sshll.u32 %s797_s8, 4  ;;  %s456_s22 = int_to_ptr.hbm [resolvable:$true] %s455_s22 }
   0xb   :  { %v726_v6 = vld [vmem:[%s789_s0] sm:$0xff]  ;;  %v578_v24 = vld [vmem:[#allocation3 + $0x28] sm:$0xff]  ;;  %v583_v38 = vld [vmem:[#allocation3 + $0x50] sm:$0xff]  ;;  %s453_s1 = sshll.u32 %s657_s21, 4  ;;  %vm446_vm3 = vcmask 1024   ;;  %s454_s1 = int_to_ptr.vmem [resolvable:$true] %s453_s1 }
   0xc   :  { %v576_v7 = vld [vmem:[#allocation3 + $0x18] sm:$0xff]  ;;  %v573_v10 = vld [vmem:[#allocation3] sm:$0xff]  ;;  %v582_v39 = vld [vmem:[#allocation3 + $0x48] sm:$0xff] }
   0xd   :  { %477 = vmatmul.msk.bf16.vlgmr.msra.gmra.mxu0 %vm68_vm0, %v571_v2  ;;  %154 = vmatpush.bf16.msra.mxu2 %v576_v7  ;;  %v597_v12 = vld [vmem:[%s793_s4] ss:$0 sm:$0xff]  ;;  %v577_v25 = vld [vmem:[#allocation3 + $0x20] sm:$0xff]  ;;  %v592_v52 = vld [vmem:[%s795_s6 + $0x38] sm:$0xff] }
   0xe   :  { %v580_v22 = vld [vmem:[#allocation3 + $0x38] sm:$0xff]  ;;  %v598_v27 = vld [vmem:[%s793_s4 + $0x1] ss:$0 sm:$0xff]  ;;  %v599_v42 = vld [vmem:[%s793_s4 + $0x2] ss:$0 sm:$0xff] }
   0xf   :  { %224 = vmatpush.bf16.msrb.mxu0 %v580_v22  ;;  %v584_v37 = vld [vmem:[#allocation3 + $0x58] sm:$0xff]  ;;  %v581_v40 = vld [vmem:[#allocation3 + $0x40] sm:$0xff]  ;;  %v591_v54 = vld [vmem:[%s795_s6 + $0x30] sm:$0xff] }
  0x10   :  { %v600_v53 = vld [vmem:[%s793_s4 + $0x3] ss:$0 sm:$0xff]  ;;  %v590_v57 = vld [vmem:[%s795_s6 + $0x28] sm:$0xff]  ;;  %v588_v1 = vld [vmem:[%s795_s6 + $0x18] sm:$0xff] }
  0x11   :  { %155 = vmatpush.bf16.msra.mxu2 %v575_v8  ;;  %v589_v60 = vld [vmem:[%s795_s6 + $0x20] sm:$0xff] }
  0x12   :  { %v324_v8 = vld [vmem:[%s794_s5] sm:$0x1] }
  0x13   :  { %225 = vmatpush.bf16.msrb.mxu0 %v579_v23 }
  0x15   :  { %156 = vmatpush.bf16.msra.mxu2 %v574_v9 }
  0x17   :  { %226 = vmatpush.bf16.msrb.mxu0 %v578_v24 }
  0x19   :  { %157 = vmatpush.bf16.msra.mxu2 %v573_v10 }
  0x1b   :  { %227 = vmatpush.bf16.msrb.mxu0 %v577_v25  ;;  %v601_v25 = vld [vmem:[#allocation2] ss:$0 sm:$0xff] }
  0x8a   :  { %v81_v3 = vpop.f32.mrf.mxu0 }
  0x92   :  { %v83_v4 = vpop.f32.mrf.mxu0 }
  0x93   :  { %v86_v5 = vpack.c.bf16 %v83_v4, %v81_v3 }
  0x95   :  { %104 = vmatpush.bf16.msra.mxu3 %v86_v5 }
  0x98   :  { %482 = vmatmul.msk.bf16.vlgmr.msra.gmra.mxu3 %vm68_vm0, %v726_v6 }
 0x11b   :  { %v106_v11 = vpop.f32.mrf.mxu3 }
 0x11c   :  { %v107_v13 = vadd.f32 %v597_v12, %v106_v11  ;;  %v586_v11 = vld [vmem:[%s795_s6 + $0x8] sm:$0xff] }
 0x11e   :  { %v111_v16 = vmax.f32 %v107_v13, 0.0 }
 0x123   :  { %v108_v14 = vpop.f32.mrf.mxu3 }
 0x124   :  { %v109_v15 = vadd.f32 %v597_v12, %v108_v14 }
 0x126   :  { %v112_v17 = vmax.f32 %v109_v15, 0.0 }
 0x128   :  { %v113_v18 = vpack.c.bf16 %v112_v17, %v111_v16 }
 0x12a   :  { %499 = vmatmul.msk.bf16.vlgmr.msra.gmra.mxu2 %vm146_vm1, %v113_v18 }
 0x1ad   :  { %v159_v19 = vpop.f32.mrf.mxu2 }
 0x1b5   :  { %v161_v20 = vpop.f32.mrf.mxu2 }
 0x1b6   :  { %v164_v21 = vpack.c.bf16 %v161_v20, %v159_v19  ;;  %v585_v19 = vld [vmem:[%s795_s6] sm:$0xff] }
 0x1b8   :  { %174 = vmatpush.bf16.msrb.mxu3 %v164_v21 }
 0x1bb   :  { %500 = vmatmul.msk.bf16.vlgmr.msrb.gmra.mxu3 %vm68_vm0, %v726_v6 }
 0x1bc   :  { %294 = vmatpush.bf16.msra.mxu3 %v584_v37 }
 0x1c0   :  { %295 = vmatpush.bf16.msra.mxu3 %v583_v38 }
 0x1c4   :  { %296 = vmatpush.bf16.msra.mxu3 %v582_v39 }
 0x1c8   :  { %297 = vmatpush.bf16.msra.mxu3 %v581_v40 }
 0x23e   :  { %v176_v26 = vpop.f32.mrf.mxu3 }
 0x23f   :  { %v177_v28 = vadd.f32 %v598_v27, %v176_v26 }
 0x241   :  { %v181_v31 = vmax.f32 %v177_v28, 0.0 }
 0x246   :  { %v178_v29 = vpop.f32.mrf.mxu3 }
 0x247   :  { %v179_v30 = vadd.f32 %v598_v27, %v178_v29 }
 0x249   :  { %v182_v32 = vmax.f32 %v179_v30, 0.0 }
 0x24b   :  { %v183_v33 = vpack.c.bf16 %v182_v32, %v181_v31 }
 0x24d   :  { %517 = vmatmul.msk.bf16.vlgmr.msrb.gmra.mxu0 %vm146_vm1, %v183_v33 }
 0x2ca   :  { %v229_v34 = vpop.f32.mrf.mxu0 }
 0x2d2   :  { %v231_v35 = vpop.f32.mrf.mxu0 }
 0x2d3   :  { %v234_v36 = vpack.c.bf16 %v231_v35, %v229_v34 }
 0x2d5   :  { %244 = vmatpush.bf16.msra.mxu1 %v234_v36 }
 0x2d8   :  { %518 = vmatmul.msk.bf16.vlgmr.msra.gmra.mxu1 %vm68_vm0, %v726_v6 }
 0x2d9   :  { %433 = vmatpush.bf16.msrb.mxu1 %v592_v52 }
 0x2dd   :  { %434 = vmatpush.bf16.msrb.mxu1 %v591_v54 }
 0x2e1   :  { %435 = vmatpush.bf16.msrb.mxu1 %v590_v57 }
 0x2e5   :  { %436 = vmatpush.bf16.msrb.mxu1 %v589_v60 }
 0x2e9   :  { %437 = vmatpush.bf16.msrb.mxu1 %v588_v1 }
 0x355   :  { %v246_v41 = vpop.f32.mrf.mxu1 }
 0x356   :  { %v247_v43 = vadd.f32 %v599_v42, %v246_v41 }
 0x358   :  { %v251_v46 = vmax.f32 %v247_v43, 0.0 }
 0x35d   :  { %v248_v44 = vpop.f32.mrf.mxu1 }
 0x35e   :  { %v249_v45 = vadd.f32 %v599_v42, %v248_v44 }
 0x360   :  { %v252_v47 = vmax.f32 %v249_v45, 0.0 }
 0x362   :  { %v253_v48 = vpack.c.bf16 %v252_v47, %v251_v46 }
 0x364   :  { %535 = vmatmul.msk.bf16.vlgmr.msra.gmra.mxu3 %vm146_vm1, %v253_v48 }
 0x3e7   :  { %v299_v49 = vpop.f32.mrf.mxu3 }
 0x3ef   :  { %v301_v50 = vpop.f32.mrf.mxu3 }
 0x3f0   :  { %v304_v51 = vpack.c.bf16 %v301_v50, %v299_v49 }
 0x3f2   :  { %314 = vmatpush.bf16.msrb.mxu2 %v304_v51 }
 0x3f5   :  { %536 = vmatmul.msk.bf16.vlgmr.msrb.gmra.mxu2 %vm68_vm0, %v726_v6  ;;  %v587_v6 = vld [vmem:[%s795_s6 + $0x10] sm:$0xff] }
 0x3f6   :  { %438 = vmatpush.bf16.msrb.mxu1 %v587_v6 }
 0x3fa   :  { %439 = vmatpush.bf16.msrb.mxu1 %v586_v11 }
 0x3fe   :  { %440 = vmatpush.bf16.msrb.mxu1 %v585_v19 }
 0x478   :  { %v316_v55 = vpop.f32.mrf.mxu2 }
 0x479   :  { %v317_v56 = vadd.f32 %v600_v53, %v316_v55 }
 0x47b   :  { %v321_v58 = vmax.f32 %v317_v56, 0.0 }
 0x47d   :  { %v341_v59 = vsel %vm146_vm1, %v321_v58, -inf }
 0x47e   :  { %v342_v61 = vrot.slane %v341_v59, 4 }
 0x480   :  { %v343_v62 = vmax.f32 %v341_v59, %v342_v61  ;;  %v318_v63 = vpop.f32.mrf.mxu2 }
 0x481   :  { %v319_v0 = vadd.f32 %v600_v53, %v318_v63 }
 0x482   :  { %v344_v3 = vrot.slane %v343_v62, 2 }
 0x483   :  { %v322_v2 = vmax.f32 %v319_v0, 0.0 }
 0x484   :  { %v345_v9 = vmax.f32 %v343_v62, %v344_v3 }
 0x485   :  { %v323_v4 = vpack.c.bf16 %v322_v2, %v321_v58  ;;  %v348_v5 = vsel %vm146_vm1, %v322_v2, -inf }
 0x486   :  { %v349_v7 = vrot.slane %v348_v5, 4  ;;  %v346_v14 = vrot.slane %v345_v9, 1 }
 0x487   :  { %335 = vmatpush.bf16.msra.mxu0 %v323_v4 }
 0x488   :  { %v350_v10 = vmax.f32 %v348_v5, %v349_v7  ;;  %v347_v16 = vmax.f32 %v345_v9, %v346_v14 }
 0x48a   :  { %v351_v12 = vrot.slane %v350_v10, 2  ;;  %537 = vmatmul.msk.bf16.vlgmr.msra.gmra.mxu0 %vm68_vm0, %v324_v8 }
 0x48c   :  { %v352_v13 = vmax.f32 %v350_v10, %v351_v12 }
 0x48e   :  { %v353_v15 = vrot.slane %v352_v13, 1 }
 0x490   :  { %v354_v17 = vmax.f32 %v352_v13, %v353_v15 }
 0x492   :  { %v358_v18 = vsel %vm357_vm2, %v354_v17, %v347_v16 }
 0x493   :  { %359 = vrot.lane.b32.xlu0 %v358_v18, %s655_s16 }
 0x505   :  { %v360_v20 = vpop.permute.xlu0 %359 }
 0x507   :  { %v337_v21 = vpop.f32.mrf.mxu0 }
 0x508   :  { %v362_v22 = vsel %vm146_vm1, %v337_v21, %v360_v20 }
 0x509   :  { %363 = vst [vmem:[#allocation6] sm:$0x3] %v362_v22  ;;  %v364_v23 = vpack.c.bf16 %v362_v22, %v362_v22 }
 0x50a   :  { %458 = dma.vmem_to_hbm [thread:$0]  %s454_s1, 32, %s456_s22, [#allocation5]  }
 0x50b   :  { %441 = vmatmul.bf16.vlgmr.msrb.gmra.mxu1 %v364_v23 }
 0x50f   :  { %v339_v24 = vpop.f32.mrf.mxu0 }
 0x588   :  { %v442_v26 = vpop.f32.mrf.mxu1 }
 0x589   :  { %v443_v27 = vadd.f32 %v601_v25, %v442_v26 }
 0x58b   :  { %447 = vst.msk [vmem:[%s798_s9] sm:$0x3] %vm446_vm3, %v443_v27 }
 0x590   :  { %v444_v28 = vpop.f32.mrf.mxu1 }
 0x591   :  { %652 = dma.done.wait [#allocation5], 32  }
 0x592   :  { %653 = vsyncadd [#allocation5], 4294967264 }
 0x593   :  { %467 = vsyncpa [#allocation4], 1 }
 0x594   :  { %468 = vsyncpa [#allocation5], 1 }

</bundles_post_ra>
